<compile_context>
chip_gen: v6e
topology: v6e:2x2x1
jax: 0.10.0
libtpu: 0.0.40
codegen_flags: <defaults>
</compile_context>

<pallas_src>
import math

import jax
import jax.numpy as jnp
from jax.experimental import pallas as pl
from jax.experimental.pallas import tpu as pltpu


def _tokenizer_kernel(x_ref, wa_ref, wv_ref, o_ref):
    """Tokenizer forward for one batch block.

    x_ref:  (Bb, N, C)      VMEM  input tokens (Bb = batch rows in this block)
    wa_ref: (L_pad, C)      VMEM  token_wA (zero-padded on L, shared across batch)
    wv_ref: (C, C)          VMEM  token_wV
    o_ref:  (Bb, L_pad, C)  VMEM  output tokens
    """
    b_sz, n_sz, c_sz = x_ref.shape
    l_sz = wa_ref.shape[0]

    x = x_ref[...]                                                # (Bb, N, C) f32

    # Broadcast wA over batch ONCE in-kernel (tiny VPU work, no extra HBM array
    # or input DMA stream) so both batched einsums are the known-good
    # flash-attention patterns ('blc,bnc->bln' and 'bln,bnc->blc').
    wa = jnp.broadcast_to(wa_ref[...][None, :, :], (b_sz, l_sz, c_sz))

    # logits[b,l,n] = sum_c wa[l,c] * x[b,n,c] -> softmax over the lane axis (N).
    logits = jnp.einsum('blc,bnc->bln', wa, x,
                        preferred_element_type=jnp.float32)       # (Bb, L_pad, N)

    logits = logits - jnp.max(logits, axis=-1, keepdims=True)
    p = jnp.exp(logits)
    denom = jnp.sum(p, axis=-1, keepdims=True)
    attn = p * pl.reciprocal(denom)                               # exact recip, EUP slot

    # VV = X @ wV as ONE flat MXU matmul over this block (M = Bb*N rows).
    x_flat = x.reshape(b_sz * n_sz, c_sz)                         # leading-dim reshape only
    vv = jnp.dot(x_flat, wv_ref[...],
                 preferred_element_type=jnp.float32)              # (Bb*N, C)
    vv = vv.reshape(b_sz, n_sz, c_sz)                             # (Bb, N, C)

    # out[b,l,c] = sum_n attn[b,l,n] * vv[b,n,c]
    out = jnp.einsum('bln,bnc->blc', attn, vv,
                     preferred_element_type=jnp.float32)          # (Bb, L_pad, C)
    o_ref[...] = out.astype(o_ref.dtype)


def tokenizer_forward(x, token_wA, token_wV):
    """Forward pass of Tokenizer.  x: (B, N, cT) -> (B, L, cT)."""
    b, n, c = x.shape
    l = token_wA.shape[1]

    # Sublane-align L (pad to a multiple of 8).  Padded (zero) wA rows give a
    # uniform softmax row -> harmless, sliced off below.
    l_pad = max(8, pl.cdiv(l, 8) * 8)
    wa = token_wA[0]                                              # (L, C), no broadcast/astype
    if l_pad != l:
        wa = jnp.pad(wa, ((0, l_pad - l), (0, 0)))                # (L_pad, C)
    wv = token_wV[0]                                              # (C, C)

    flops = 2 * b * n * c * l_pad + 2 * b * n * c * c + 2 * b * l_pad * n * c
    bytes_accessed = 4 * (x.size + wa.size + wv.size + b * l_pad * c)
    cost = pl.CostEstimate(flops=flops, transcendentals=b * l_pad * n,
                           bytes_accessed=bytes_accessed)

    # v7x / scalability guard: grid over batch (both TensorCores, bounded VMEM)
    # once the batch is big enough to amortize the ~0.35us per-grid-step cost;
    # otherwise run the whole (tiny) problem in one grid step.
    if b >= 8:
        grid = (b,)
        in_specs = [
            pl.BlockSpec((1, n, c), lambda i: (i, 0, 0)),
            pl.BlockSpec((l_pad, c), lambda i: (0, 0)),
            pl.BlockSpec((c, c), lambda i: (0, 0)),
        ]
        out_specs = pl.BlockSpec((1, l_pad, c), lambda i: (i, 0, 0))
        dims = ("parallel",)
    else:
        grid = (1,)
        in_specs = [
            pl.BlockSpec((b, n, c), lambda i: (0, 0, 0)),
            pl.BlockSpec((l_pad, c), lambda i: (0, 0)),
            pl.BlockSpec((c, c), lambda i: (0, 0)),
        ]
        out_specs = pl.BlockSpec((b, l_pad, c), lambda i: (0, 0, 0))
        dims = ("arbitrary",)

    out = pl.pallas_call(
        _tokenizer_kernel,
        out_shape=jax.ShapeDtypeStruct((b, l_pad, c), x.dtype),
        grid_spec=pltpu.PrefetchScalarGridSpec(
            num_scalar_prefetch=0,
            grid=grid,
            in_specs=in_specs,
            out_specs=out_specs,
        ),
        compiler_params=pltpu.CompilerParams(dimension_semantics=dims),
        cost_estimate=cost,
    )(x, wa, wv)

    return out if l_pad == l else out[:, :l, :]


def _reference_forward(x, token_wA, token_wV):
    """Pure-JAX reference mirroring the PyTorch forward exactly."""
    wa = jnp.swapaxes(token_wA, 1, 2)            # (1, cT, L)
    A = jnp.matmul(x, wa)                        # (B, N, L)   (batch-1 broadcast)
    A = jnp.swapaxes(A, 1, 2)                    # (B, L, N)
    A = jax.nn.softmax(A, axis=-1)
    VV = jnp.matmul(x, token_wV)                 # (B, N, cT)
    return jnp.matmul(A, VV)                     # (B, L, cT)


if __name__ == "__main__":
    key = jax.random.PRNGKey(0)
    k_x, k_wa, k_wv, k_x2 = jax.random.split(key, 4)

    N = 64                # 64 input tokens (e.g. 8x8 flattened patches)
    L, CT = 4, 40         # module defaults: L=4 output tokens, cT=40 channels

    # xavier_normal_-style synthetic init (std = sqrt(2/(fan_in+fan_out))).
    std_wa = math.sqrt(2.0 / (L * CT + CT))
    std_wv = math.sqrt(2.0 / (CT * CT + CT * CT))
    token_wA = std_wa * jax.random.normal(k_wa, (1, L, CT), dtype=jnp.float32)
    token_wV = std_wv * jax.random.normal(k_wv, (1, CT, CT), dtype=jnp.float32)

    # Small batch -> collapsed grid path.
    B = 2
    x = jax.random.normal(k_x, (B, N, CT), dtype=jnp.float32)
    out = jax.block_until_ready(tokenizer_forward(x, token_wA, token_wV))
    ref = _reference_forward(x, token_wA, token_wV)
    assert out.shape == (B, L, CT), out.shape
    assert jnp.allclose(out, ref, atol=1e-4, rtol=1e-4), "mismatch vs reference (B=2)"

    # Larger batch -> batch-gridded (parallel) path.
    B2 = 8
    x2 = jax.random.normal(k_x2, (B2, N, CT), dtype=jnp.float32)
    out2 = jax.block_until_ready(tokenizer_forward(x2, token_wA, token_wV))
    ref2 = _reference_forward(x2, token_wA, token_wV)
    assert out2.shape == (B2, L, CT), out2.shape
    assert jnp.allclose(out2, ref2, atol=1e-4, rtol=1e-4), "mismatch vs reference (B=8)"

    print("KERNEL_OK")
</pallas_src>

<mosaic_0001>
module attributes {stable_mosaic.version = 11 : i64} {
  func.func @_tokenizer_kernel(%arg0: i32, %arg1: memref<2x64x40xf32, #tpu.memory_space<vmem>>, %arg2: memref<8x40xf32, #tpu.memory_space<vmem>>, %arg3: memref<40x40xf32, #tpu.memory_space<vmem>>, %arg4: memref<2x8x40xf32, #tpu.memory_space<vmem>>) attributes {dimension_semantics = [#tpu.dimension_semantics<arbitrary>], iteration_bounds = array<i64: 1>, scalar_prefetch = 0 : i64, scratch_operands = 0 : i64, tpu.core_type = #tpu.core_type<tc>, window_params = [{pipeline_mode = #tpu.pipeline_mode<synchronous>, transform_indices = @transform_0, window_bounds = array<i64: 2, 64, 40>}, {pipeline_mode = #tpu.pipeline_mode<synchronous>, transform_indices = @transform_1, window_bounds = array<i64: 8, 40>}, {pipeline_mode = #tpu.pipeline_mode<synchronous>, transform_indices = @transform_2, window_bounds = array<i64: 40, 40>}, {pipeline_mode = #tpu.pipeline_mode<synchronous>, transform_indices = @transform_3, window_bounds = array<i64: 2, 8, 40>}]} {
    %c0 = arith.constant 0 : index
    %c0_0 = arith.constant 0 : index
    %c0_1 = arith.constant 0 : index
    %0 = vector.load %arg1[%c0, %c0_0, %c0_1] : memref<2x64x40xf32, #tpu.memory_space<vmem>>, vector<2x64x40xf32>
    %c0_2 = arith.constant 0 : index
    %c0_3 = arith.constant 0 : index
    %1 = vector.load %arg2[%c0_2, %c0_3] : memref<8x40xf32, #tpu.memory_space<vmem>>, vector<8x40xf32>
    %2 = vector.shape_cast %1 : vector<8x40xf32> to vector<1x8x40xf32>
    %3 = vector.shape_cast %2 : vector<1x8x40xf32> to vector<1x8x40xf32>
    %4 = vector.broadcast %3 : vector<1x8x40xf32> to vector<2x8x40xf32>
    "tpu.trace_start"() <{level = 10 : i32, message = "blc,bnc->bln"}> : () -> ()
    %cst = arith.constant dense<0.000000e+00> : vector<2x8x64xf32>
    %5 = tpu.matmul %4, %0, %cst {dimension_numbers = #tpu.dot_dimension_numbers<[2], [2], [1], [1], [0, 0, 0, 1, 1, 1], [0], [0]>} : vector<2x8x40xf32>, vector<2x64x40xf32>, vector<2x8x64xf32> -> vector<2x8x64xf32>
    "tpu.trace_stop"() : () -> ()
    %cst_4 = arith.constant dense<0xFF800000> : vector<2x8xf32>
    %6 = vector.multi_reduction <maximumf>, %5, %cst_4 [2] : vector<2x8x64xf32> to vector<2x8xf32>
    %7 = vector.shape_cast %6 : vector<2x8xf32> to vector<2x8x1xf32>
    %8 = vector.broadcast %7 : vector<2x8x1xf32> to vector<2x8x64xf32>
    %9 = arith.subf %5, %8 : vector<2x8x64xf32>
    %10 = math.exp %9 : vector<2x8x64xf32>
    %cst_5 = arith.constant dense<0.000000e+00> : vector<2x8xf32>
    %11 = vector.multi_reduction <add>, %10, %cst_5 [2] : vector<2x8x64xf32> to vector<2x8xf32>
    %12 = vector.shape_cast %11 : vector<2x8xf32> to vector<2x8x1xf32>
    %13 = tpu.reciprocal %12 : vector<2x8x1xf32> -> vector<2x8x1xf32>
    %14 = vector.broadcast %13 : vector<2x8x1xf32> to vector<2x8x64xf32>
    %15 = arith.mulf %10, %14 : vector<2x8x64xf32>
    %16 = vector.shape_cast %0 : vector<2x64x40xf32> to vector<128x40xf32>
    %c0_6 = arith.constant 0 : index
    %c0_7 = arith.constant 0 : index
    %17 = vector.load %arg3[%c0_6, %c0_7] : memref<40x40xf32, #tpu.memory_space<vmem>>, vector<40x40xf32>
    %cst_8 = arith.constant dense<0.000000e+00> : vector<128x40xf32>
    %18 = tpu.matmul %16, %17, %cst_8 {dimension_numbers = #tpu.dot_dimension_numbers<[1], [0], [0], [1], [0, 0, 1, 1], [], []>} : vector<128x40xf32>, vector<40x40xf32>, vector<128x40xf32> -> vector<128x40xf32>
    %19 = vector.shape_cast %18 : vector<128x40xf32> to vector<2x64x40xf32>
    "tpu.trace_start"() <{level = 10 : i32, message = "bln,bnc->blc"}> : () -> ()
    %cst_9 = arith.constant dense<0.000000e+00> : vector<2x8x40xf32>
    %20 = tpu.matmul %15, %19, %cst_9 {dimension_numbers = #tpu.dot_dimension_numbers<[2], [1], [1], [2], [0, 0, 0, 1, 1, 2], [0], [0]>} : vector<2x8x64xf32>, vector<2x64x40xf32>, vector<2x8x40xf32> -> vector<2x8x40xf32>
    "tpu.trace_stop"() : () -> ()
    %c0_10 = arith.constant 0 : index
    %c0_11 = arith.constant 0 : index
    %c0_12 = arith.constant 0 : index
    %21 = vector.load %arg4[%c0_10, %c0_11, %c0_12] : memref<2x8x40xf32, #tpu.memory_space<vmem>>, vector<2x8x40xf32>
    tpu.vector_store %arg4[%c0_10, %c0_11, %c0_12], %20 {strides = array<i32>} : memref<2x8x40xf32, #tpu.memory_space<vmem>>, vector<2x8x40xf32>,
    return
  }
  func.func @transform_0(%arg0: i32) -> (i32, i32, i32) {
    %c0_i32 = arith.constant 0 : i32
    %c0_i32_0 = arith.constant 0 : i32
    %c0_i32_1 = arith.constant 0 : i32
    %c0_i32_2 = arith.constant 0 : i32
    return %c0_i32, %c0_i32_0, %c0_i32_1 : i32, i32, i32
  }
  func.func @transform_1(%arg0: i32) -> (i32, i32) {
    %c0_i32 = arith.constant 0 : i32
    %c0_i32_0 = arith.constant 0 : i32
    %c0_i32_1 = arith.constant 0 : i32
    return %c0_i32, %c0_i32_0 : i32, i32
  }
  func.func @transform_2(%arg0: i32) -> (i32, i32) {
    %c0_i32 = arith.constant 0 : i32
    %c0_i32_0 = arith.constant 0 : i32
    %c0_i32_1 = arith.constant 0 : i32
    return %c0_i32, %c0_i32_0 : i32, i32
  }
  func.func @transform_3(%arg0: i32) -> (i32, i32, i32) {
    %c0_i32 = arith.constant 0 : i32
    %c0_i32_0 = arith.constant 0 : i32
    %c0_i32_1 = arith.constant 0 : i32
    %c0_i32_2 = arith.constant 0 : i32
    return %c0_i32, %c0_i32_0, %c0_i32_1 : i32, i32, i32
  }
}

</mosaic_0001>

<bundles_post_ra>
// kernel: tpu_custom_call.1
= control target key start
LH: loop header
LB: loop body
LE: loop exit
PB: predicated region body
PF: predicated region fallthrough
CT: control target
= control target key end

     0   :  { %vm32_vm0 = vcmask 326656   ;;  %v799_v2 = vmov 0.0   ;;  %vm800_vm1 = vmmov 0   ;;  %s995_s0 = inlined_call_operand.vmem [shape: f32[2,64,40], index: 0, kind: input, shape index: {}]   ;;  %s996_s1 = inlined_call_operand.vmem [shape: f32[8,40], index: 1, kind: input, shape index: {}]   ;;  %s997_s2 = inlined_call_operand.vmem [shape: f32[40,40], index: 2, kind: input, shape index: {}]   ;;  %s998_s3 = inlined_call_operand.hbm [shape: f32[2,8,40], index: 3, kind: output, shape index: {}]  }
   0x1   :  { %v827_v0 = vld [vmem:[%s995_s0 + $0x38] sm:$0xff]  ;;  %654 = vmatprep.subr.mxu0 %v799_v2  ;;  %673 = vmatprep.subr.mxu1 %v799_v2  ;;  %v844_v3 = vld [vmem:[%s995_s0 + $0x30] sm:$0xff] }
   0x2   :  { %v832_v1 = vld [vmem:[%s995_s0 + $0x78] sm:$0xff]  ;;  %655 = vmatpush3.xpose.msk.msra.mxu0 %vm32_vm0, %v827_v0  ;;  %v850_v4 = vld [vmem:[%s995_s0 + $0x70] sm:$0xff]  ;;  %670 = vmatprep.mubr.msk.f32.mxu0 %vm800_vm1, %v799_v2 }
   0x3   :  { %674 = vmatpush3.xpose.msk.msra.mxu1 %vm32_vm0, %v832_v1  ;;  %656 = vmatprep.subr.mxu0 %v799_v2 }
   0x4   :  { %675 = vmatprep.subr.mxu1 %v799_v2  ;;  %689 = vmatprep.mubr.msk.f32.mxu1 %vm800_vm1, %v799_v2 }
   0x5   :  { %8 = vsyncpa [#allocation3], 0  ;;  %v20_v5 = vld [vmem:[%s995_s0 + $0x28] sm:$0xff]  ;;  %v19_v7 = vld [vmem:[%s995_s0 + $0x20] sm:$0xff]  ;;  %vm224_vm2 = vcmask 523264  }
   0x6   :  { %657 = vmatpush3.xpose.msk.msra.mxu0 %vm32_vm0, %v844_v3  ;;  %v868_v6 = vld [vmem:[%s995_s0 + $0x68] sm:$0xff]  ;;  %v27_v8 = vld [vmem:[%s995_s0 + $0x60] sm:$0xff]  ;;  %v18_v9 = vld [vmem:[%s995_s0 + $0x18] sm:$0xff] }
   0x7   :  { %676 = vmatpush3.xpose.msk.msra.mxu1 %vm32_vm0, %v850_v4  ;;  %658 = vmatprep.subr.mxu0 %v799_v2  ;;  %v26_v10 = vld [vmem:[%s995_s0 + $0x58] sm:$0xff]  ;;  %v17_v11 = vld [vmem:[%s995_s0 + $0x10] sm:$0xff]  ;;  %v16_v13 = vld [vmem:[%s995_s0 + $0x8] sm:$0xff] }
   0x8   :  { %677 = vmatprep.subr.mxu1 %v799_v2  ;;  %v25_v12 = vld [vmem:[%s995_s0 + $0x50] sm:$0xff]  ;;  %v24_v14 = vld [vmem:[%s995_s0 + $0x48] sm:$0xff]  ;;  %v15_v15 = vld [vmem:[%s995_s0] sm:$0xff] }
   0x9   :  { %v23_v16 = vld [vmem:[%s995_s0 + $0x40] sm:$0xff]  ;;  %v250_v19 = vld [vmem:[%s997_s2 + $0x18] sm:$0xff]  ;;  %v249_v20 = vld [vmem:[%s997_s2 + $0x10] sm:$0xff] }
   0xa   :  { %659 = vmatpush3.xpose.msk.msra.mxu0 %vm32_vm0, %v20_v5  ;;  %v31_v17 = vld [vmem:[%s996_s1] sm:$0xff]  ;;  %v248_v21 = vld [vmem:[%s997_s2 + $0x8] sm:$0xff] }
   0xb   :  { %678 = vmatpush3.xpose.msk.msra.mxu1 %vm32_vm0, %v868_v6  ;;  %660 = vmatprep.subr.mxu0 %v799_v2  ;;  %v251_v18 = vld [vmem:[%s997_s2 + $0x20] sm:$0xff] }
   0xc   :  { %679 = vmatprep.subr.mxu1 %v799_v2  ;;  %v247_v22 = vld [vmem:[%s997_s2] sm:$0xff]  ;;  %s801_s2 = smov [#allocation2]  }
   0xd   :  { %s550_s27 = sshll.u32 %s801_s2, 4  ;;  %s551_s27 = int_to_ptr.vmem [resolvable:$true] %s550_s27 }
   0xe   :  { %661 = vmatpush3.xpose.msk.msra.mxu0 %vm32_vm0, %v19_v7  ;;  %s777_s28 = scalar_lea.vmem %s551_s27, 256  ;;  %p782_p1 = scmp.lt.s32.totalorder %s551_s27, %s551_s27 }
   0xf   :  { %680 = vmatpush3.xpose.msk.msra.mxu1 %vm32_vm0, %v27_v8  ;;  %662 = vmatprep.subr.mxu0 %v799_v2  ;;  %p778_p0 = scmp.ne.s32.totalorder %s551_s27, %s777_s28  ;;  %p783_p2 = scmp.lt.s32.totalorder %s777_s28, %s777_s28 }
  0x10   :  { %681 = vmatprep.subr.mxu1 %v799_v2 }
  0x11   :  { %p784_p3 = por %p783_p2, %p782_p1 }
  0x12   :  { %663 = vmatpush3.xpose.msk.msra.mxu0 %vm32_vm0, %v18_v9 }
  0x13   :  { %682 = vmatpush3.xpose.msk.msra.mxu1 %vm32_vm0, %v26_v10  ;;  %664 = vmatprep.subr.mxu0 %v799_v2  ;;  %p785_p4 = pnand %p784_p3, %p778_p0 }
  0x14   :  { %683 = vmatprep.subr.mxu1 %v799_v2 }
  0x16   :  { %665 = vmatpush3.xpose.msk.msra.mxu0 %vm32_vm0, %v17_v11 }
  0x17   :  { %684 = vmatpush3.xpose.msk.msra.mxu1 %vm32_vm0, %v25_v12  ;;  %666 = vmatprep.subr.mxu0 %v799_v2 }
  0x18   :  { %685 = vmatprep.subr.mxu1 %v799_v2 }
  0x1a   :  { %667 = vmatpush3.xpose.msk.msra.mxu0 %vm32_vm0, %v16_v13 }
  0x1b   :  { %686 = vmatpush3.xpose.msk.msra.mxu1 %vm32_vm0, %v24_v14  ;;  %668 = vmatprep.subr.mxu0 %v799_v2 }
  0x1c   :  { %687 = vmatprep.subr.mxu1 %v799_v2 }
  0x1e   :  { %669 = vmatpush3.xpose.msk.msra.mxu0 %vm32_vm0, %v15_v15 }
  0x1f   :  { %688 = vmatpush3.xpose.msk.msra.mxu1 %vm32_vm0, %v23_v16  ;;  %692 = vmatprep.subr.mxu0 %v251_v18 }
  0x20   :  { %726 = vmatprep.subr.mxu1 %v799_v2 }
  0x21   :  { %671 = vmatmul.mubr.msk.f32.vlgmr.msra.gmra.mxu0 %vm32_vm0, %v31_v17 }
  0x22   :  { %690 = vmatmul.mubr.msk.f32.vlgmr.msra.gmra.mxu1 %vm32_vm0, %v31_v17  ;;  %702 = vmatprep.mubr.msk.f32.mxu0 %vm32_vm0, %v15_v15 }
  0x23   :  { %742 = vmatprep.mubr.msk.f32.mxu1 %vm800_vm1, %v799_v2  ;;  %693 = vmatpush3.msra.mxu0 %v251_v18 }
  0x24   :  { %694 = vmatprep.subr.mxu0 %v250_v19 }
  0x25   :  { %695 = vmatpush3.msra.mxu0 %v250_v19 }
  0x26   :  { %696 = vmatprep.subr.mxu0 %v249_v20 }
  0x27   :  { %697 = vmatpush3.msra.mxu0 %v249_v20 }
  0x28   :  { %698 = vmatprep.subr.mxu0 %v248_v21 }
  0x29   :  { %699 = vmatpush3.msra.mxu0 %v248_v21 }
  0x2a   :  { %700 = vmatprep.subr.mxu0 %v247_v22 }
  0x2b   :  { %701 = vmatpush3.msra.mxu0 %v247_v22 }
  0x2c   :  { %703 = vmatmul.mubr.msk.f32.vlgmr.msra.gmra.mxu0 %vm32_vm0, %v16_v13 }
  0x2d   :  { %705 = vmatprep.mubr.msk.f32.mxu0 %vm32_vm0, %v17_v11 }
  0x30   :  { %706 = vmatmul.mubr.msk.f32.gmra.mxu0 %vm32_vm0, %v18_v9 }
  0x31   :  { %708 = vmatprep.mubr.msk.f32.mxu0 %vm32_vm0, %v19_v7 }
  0x34   :  { %709 = vmatmul.mubr.msk.f32.gmra.mxu0 %vm32_vm0, %v20_v5 }
  0x35   :  { %711 = vmatprep.mubr.msk.f32.mxu0 %vm32_vm0, %v844_v3 }
  0x38   :  { %712 = vmatmul.mubr.msk.f32.gmra.mxu0 %vm32_vm0, %v827_v0 }
  0x39   :  { %714 = vmatprep.mubr.msk.f32.mxu0 %vm32_vm0, %v23_v16 }
  0x3c   :  { %715 = vmatmul.mubr.msk.f32.gmra.mxu0 %vm32_vm0, %v24_v14 }
  0x3d   :  { %717 = vmatprep.mubr.msk.f32.mxu0 %vm32_vm0, %v25_v12 }
  0x40   :  { %718 = vmatmul.mubr.msk.f32.gmra.mxu0 %vm32_vm0, %v26_v10 }
  0x41   :  { %720 = vmatprep.mubr.msk.f32.mxu0 %vm32_vm0, %v27_v8 }
  0x44   :  { %721 = vmatmul.mubr.msk.f32.gmra.mxu0 %vm32_vm0, %v868_v6 }
  0x45   :  { %723 = vmatprep.mubr.msk.f32.mxu0 %vm32_vm0, %v850_v4 }
  0x48   :  { %724 = vmatmul.mubr.msk.f32.gmra.mxu0 %vm32_vm0, %v832_v1 }
  0xe1   :  { %v126_v23 = vpop.f32.mrf.mxu0 }
  0xe2   :  { %v220_v24 = vpop.f32.mrf.mxu1  ;;  %v225_v25 = vsel %vm224_vm2, %v126_v23, -inf }
  0xe3   :  { %226 = vmax.xlane.f32.xlu0 %v225_v25  ;;  %v672_v26 = vpop.f32.mrf.mxu0  ;;  %v228_v28 = vsel %vm224_vm2, %v220_v24, -inf }
  0xe4   :  { %v691_v27 = vpop.f32.mrf.mxu1 }
  0xe7   :  { %229 = vmax.xlane.f32.xlu0 %v228_v28 }
  0xec   :  { %v704_v29 = vpop.f32.mrf.mxu0 }
  0xee   :  { %v318_v30 = vpop.f32.mrf.mxu0 }
  0xf0   :  { %v707_v31 = vpop.f32.mrf.mxu0 }
  0xf2   :  { %v328_v32 = vpop.f32.mrf.mxu0 }
  0xf4   :  { %v710_v33 = vpop.f32.mrf.mxu0 }
  0xf6   :  { %v338_v34 = vpop.f32.mrf.mxu0 }
  0xf8   :  { %v713_v35 = vpop.f32.mrf.mxu0 }
  0xf9   :  { %727 = vmatpush3.msra.mxu1 %v713_v35 }
  0xfa   :  { %v348_v36 = vpop.f32.mrf.mxu0  ;;  %728 = vmatprep.subr.mxu1 %v799_v2 }
  0xfb   :  { %729 = vmatpush3.msra.mxu1 %v348_v36 }
  0xfc   :  { %730 = vmatprep.subr.mxu1 %v799_v2  ;;  %v716_v47 = vpop.f32.mrf.mxu0 }
  0xfd   :  { %731 = vmatpush3.msra.mxu1 %v710_v33 }
  0xfe   :  { %732 = vmatprep.subr.mxu1 %v799_v2  ;;  %v358_v48 = vpop.f32.mrf.mxu0 }
  0xff   :  { %733 = vmatpush3.msra.mxu1 %v338_v34 }
 0x100   :  { %734 = vmatprep.subr.mxu1 %v799_v2  ;;  %v719_v49 = vpop.f32.mrf.mxu0 }
 0x101   :  { %735 = vmatpush3.msra.mxu1 %v707_v31 }
 0x102   :  { %736 = vmatprep.subr.mxu1 %v799_v2  ;;  %v368_v51 = vpop.f32.mrf.mxu0 }
 0x103   :  { %737 = vmatpush3.msra.mxu1 %v328_v32 }
 0x104   :  { %738 = vmatprep.subr.mxu1 %v799_v2  ;;  %v722_v52 = vpop.f32.mrf.mxu0 }
 0x105   :  { %739 = vmatpush3.msra.mxu1 %v704_v29 }
 0x106   :  { %740 = vmatprep.subr.mxu1 %v799_v2  ;;  %v378_v53 = vpop.f32.mrf.mxu0 }
 0x107   :  { %741 = vmatpush3.msra.mxu1 %v318_v30 }
 0x108   :  { %745 = vmatprep.subr.mxu1 %v799_v2  ;;  %v725_v56 = vpop.f32.mrf.mxu0 }
 0x10a   :  { %v388_v58 = vpop.f32.mrf.mxu0 }
 0x16c   :  { %v227_v37 = vpop.xlane.xlu0 %226 }
 0x16d   :  { %v231_v38 = vsub.f32 %v126_v23, %v227_v37 }
 0x16f   :  { %v233_v39 = vmul.f32 1.442695, %v231_v38 }
 0x170   :  { %v230_v40 = vpop.xlane.xlu0 %229 }
 0x171   :  { %769 = vpow2.f32 %v233_v39  ;;  %v232_v41 = vsub.f32 %v220_v24, %v230_v40 }
 0x173   :  { %v235_v42 = vmul.f32 1.442695, %v232_v41 }
 0x175   :  { %771 = vpow2.f32 %v235_v42 }
 0x17e   :  { %v770_v43 = vpop.eup %769 }
 0x17f   :  { %v237_v44 = vsel %vm224_vm2, %v770_v43, 0.0 }
 0x180   :  { %238 = vadd.xlane.f32.xlu1 %v237_v44 }
 0x182   :  { %v772_v45 = vpop.eup %771 }
 0x183   :  { %v240_v46 = vsel %vm224_vm2, %v772_v45, 0.0 }
 0x184   :  { %241 = vadd.xlane.f32.xlu1 %v240_v46 }
 0x209   :  { %v239_v50 = vpop.xlane.xlu1 %238 }
 0x20a   :  { %773 = vrcp.f32 %v239_v50 }
 0x20d   :  { %v242_v54 = vpop.xlane.xlu1 %241 }
 0x20e   :  { %775 = vrcp.f32 %v242_v54 }
 0x217   :  { %v774_v55 = vpop.eup %773 }
 0x218   :  { %v245_v57 = vmul.f32 %v774_v55, %v770_v43 }
 0x21a   :  { %743 = vmatmul.mubr.msk.f32.vlgmr.msra.gmra.mxu1 %vm224_vm2, %v245_v57 }
 0x21b   :  { %746 = vmatpush3.msra.mxu1 %v725_v56  ;;  %761 = vmatprep.mubr.msk.f32.mxu1 %vm800_vm1, %v799_v2  ;;  %v776_v59 = vpop.eup %775 }
 0x21c   :  { %747 = vmatprep.subr.mxu1 %v799_v2  ;;  %v246_v60 = vmul.f32 %v776_v59, %v772_v45 }
 0x21d   :  { %748 = vmatpush3.msra.mxu1 %v388_v58 }
 0x21e   :  { %749 = vmatprep.subr.mxu1 %v799_v2 }
 0x21f   :  { %750 = vmatpush3.msra.mxu1 %v722_v52 }
 0x220   :  { %751 = vmatprep.subr.mxu1 %v799_v2 }
 0x221   :  { %752 = vmatpush3.msra.mxu1 %v378_v53 }
 0x222   :  { %753 = vmatprep.subr.mxu1 %v799_v2 }
 0x223   :  { %754 = vmatpush3.msra.mxu1 %v719_v49 }
 0x224   :  { %755 = vmatprep.subr.mxu1 %v799_v2 }
 0x225   :  { %756 = vmatpush3.msra.mxu1 %v368_v51 }
 0x226   :  { %757 = vmatprep.subr.mxu1 %v799_v2 }
 0x227   :  { %758 = vmatpush3.msra.mxu1 %v716_v47 }
 0x228   :  { %759 = vmatprep.subr.mxu1 %v799_v2 }
 0x229   :  { %760 = vmatpush3.msra.mxu1 %v358_v48 }
 0x22a   :  { %762 = vmatmul.mubr.msk.f32.vlgmr.msra.gmra.mxu1 %vm224_vm2, %v246_v60 }
 0x2da   :  { %v466_v61 = vpop.f32.mrf.mxu1 }
 0x2db   :  { %543 = vst.msk [vmem:[#allocation2] sm:$0xff] %vm32_vm0, %v466_v61 }
 0x2dc   :  { %v744_v62 = vpop.f32.mrf.mxu1 }
 0x2ea   :  { %v539_v63 = vpop.f32.mrf.mxu1 }
 0x2eb   :  { %544 = vst.msk [vmem:[#allocation2 + $0x8] sm:$0xff] %vm32_vm0, %v539_v63 }
 0x2ec   :  { %v763_v0 = vpop.f32.mrf.mxu1 }
 0x2ed   :  { %788 = shalt.err (!%p785_p4)
}
 0x2ee   :  { %s802_s29 = smov 128   ;;  %s803_s30 = smov 8  }
 0x2ef   :  { %556 = dma.vmem_to_hbm [thread:$0]  %s551_s27, 256, %s998_s3, [#allocation3], %s802_s29, %s802_s29, %s803_s30  }
 0x2f0   :  { %797 = dma.done.wait [#allocation3], 256  }
 0x2f1   :  { %798 = vsyncadd [#allocation3], 4294967040 }
 0x2f2   :  { %560 = vsyncpa [#allocation3], 1 }

</bundles_post_ra>
